<compile_context>
chip_gen: v6e
topology: v6e:2x2x1
jax: 0.10.0
libtpu: 0.0.40
codegen_flags: <defaults>
</compile_context>

<pallas_src>
import jax
import jax.numpy as jnp
from jax.experimental import pallas as pl
from jax.experimental.pallas import tpu as pltpu


def _pos_emb_copy_kernel(table_ref, out_ref):
    # table_ref: (TS, hidden)      VMEM  (one row-tile of the embedding table)
    # out_ref:   (1, TS, hidden)   VMEM  (corresponding output tile)
    out_ref[0] = table_ref[...]


def _pos_emb_slice_kernel(table_ref, out_ref):
    # Fallback (layout-unfriendly seq_length): whole table in VMEM, slice rows.
    s = out_ref.shape[1]
    out_ref[0] = table_ref[:s, :]


def positional_embeddings_forward(input_ids, table, *, max_tile_rows=512):
    """input_ids: (batch, seq_length) int32 — only its shape matters (as in PyTorch).
    table: (seq_len_max, hidden_size) embedding weight.
    Returns: (1, seq_length, hidden_size), dtype of `table`."""
    seq_length = input_ids.shape[1]
    seq_len_max, hidden = table.shape
    assert seq_length <= seq_len_max, "seq_length exceeds configured seq_len"

    out_shape = jax.ShapeDtypeStruct((1, seq_length, hidden), table.dtype)

    # Fast path: tile the copy over the sequence dimension so the runtime
    # double-buffers DMA-in with DMA-out and VMEM stays bounded for big tables.
    # Requires a row-tile that is a multiple of 8 (sublane constraint) and that
    # evenly divides seq_length.
    if seq_length % 8 == 0:
        ts = min(seq_length, max_tile_rows)
        while seq_length % ts != 0:
            ts -= 8
        grid = (seq_length // ts,)
        return pl.pallas_call(
            _pos_emb_copy_kernel,
            out_shape=out_shape,
            grid=grid,
            in_specs=[
                # Only the first seq_length rows of the table are ever touched.
                pl.BlockSpec((ts, hidden), lambda i: (i, 0)),
            ],
            out_specs=pl.BlockSpec((1, ts, hidden), lambda i: (0, i, 0)),
            compiler_params=pltpu.CompilerParams(
                dimension_semantics=("parallel",)),
        )(table)

    # Fallback for layout-unfriendly seq_length (not a multiple of 8):
    # load the whole table once and slice inside the kernel.
    return pl.pallas_call(
        _pos_emb_slice_kernel,
        out_shape=out_shape,
        grid=(1,),
        in_specs=[pl.BlockSpec((seq_len_max, hidden), lambda i: (0, 0))],
        out_specs=pl.BlockSpec((1, seq_length, hidden), lambda i: (0, 0, 0)),
        compiler_params=pltpu.CompilerParams(
            dimension_semantics=("arbitrary",)),
    )(table)


if __name__ == "__main__":
    # Config: seq_len (max positions) = 16, hidden_size = 32
    SEQ_LEN = 16
    HIDDEN = 32
    BATCH = 2
    SEQ_LENGTH = 8  # length of the incoming input_ids

    key = jax.random.PRNGKey(0)
    k_tab, k_ids = jax.random.split(key)

    # nn.Embedding default init: N(0, 1)
    table = jax.random.normal(k_tab, (SEQ_LEN, HIDDEN), dtype=jnp.float32)
    input_ids = jax.random.randint(k_ids, (BATCH, SEQ_LENGTH), 0, SEQ_LEN,
                                   dtype=jnp.int32)

    out = positional_embeddings_forward(input_ids, table)
    out = jax.block_until_ready(out)

    # Reference check: pure-JAX equivalent of the PyTorch forward.
    pos_ids = jnp.arange(SEQ_LENGTH, dtype=jnp.int32)[None, :]
    ref = table[pos_ids]  # (1, SEQ_LENGTH, HIDDEN)
    assert out.shape == (1, SEQ_LENGTH, HIDDEN), out.shape
    assert jnp.allclose(out, ref, atol=1e-6), "mismatch vs reference"

    print("KERNEL_OK")
</pallas_src>

<mosaic_0001>
module attributes {stable_mosaic.version = 11 : i64} {
  func.func @_pos_emb_copy_kernel(%arg0: i32, %arg1: memref<8x32xf32, #tpu.memory_space<vmem>>, %arg2: memref<1x8x32xf32, #tpu.memory_space<vmem>>) attributes {dimension_semantics = [#tpu.dimension_semantics<parallel>], iteration_bounds = array<i64: 1>, scalar_prefetch = 0 : i64, scratch_operands = 0 : i64, tpu.core_type = #tpu.core_type<tc>, window_params = [{transform_indices = @transform_0, window_bounds = array<i64: 8, 32>}, {transform_indices = @transform_1, window_bounds = array<i64: 1, 8, 32>}]} {
    %c0 = arith.constant 0 : index
    %c0_0 = arith.constant 0 : index
    %0 = vector.load %arg1[%c0, %c0_0] : memref<8x32xf32, #tpu.memory_space<vmem>>, vector<8x32xf32>
    %c0_1 = arith.constant 0 : index
    %c0_2 = arith.constant 0 : index
    %c0_3 = arith.constant 0 : index
    %1 = vector.load %arg2[%c0_1, %c0_2, %c0_3] : memref<1x8x32xf32, #tpu.memory_space<vmem>>, vector<1x8x32xf32>
    %2 = vector.shape_cast %1 : vector<1x8x32xf32> to vector<8x32xf32>
    %3 = vector.shape_cast %0 : vector<8x32xf32> to vector<1x8x32xf32>
    tpu.vector_store %arg2[%c0_1, %c0_2, %c0_3], %3 {strides = array<i32>} : memref<1x8x32xf32, #tpu.memory_space<vmem>>, vector<1x8x32xf32>,
    return
  }
  func.func @transform_0(%arg0: i32) -> (i32, i32) {
    %c0_i32 = arith.constant 0 : i32
    %c0_i32_0 = arith.constant 0 : i32
    return %arg0, %c0_i32 : i32, i32
  }
  func.func @transform_1(%arg0: i32) -> (i32, i32, i32) {
    %c0_i32 = arith.constant 0 : i32
    %c0_i32_0 = arith.constant 0 : i32
    %c0_i32_1 = arith.constant 0 : i32
    return %c0_i32, %arg0, %c0_i32_0 : i32, i32, i32
  }
}

</mosaic_0001>

<bundles_post_ra>
// kernel: tpu_custom_call.1
= control target key start
LH: loop header
LB: loop body
LE: loop exit
PB: predicated region body
PF: predicated region fallthrough
CT: control target
= control target key end

     0   :  { %6 = vsyncpa [#allocation3], 0  ;;  %s103_s0 = inlined_call_operand.hbm [shape: f32[16,32], index: 0, kind: input, shape index: {}]   ;;  %s104_s1 = inlined_call_operand.hbm [shape: f32[1,8,32], index: 1, kind: output, shape index: {}]  }
   0x1   :  { %7 = vsyncpa [#allocation4], 0  ;;  %s85_s6 = smov [#allocation2]  }
   0x2   :  { %s14_s7 = sshll.u32 %s85_s6, 4  ;;  %s15_s7 = int_to_ptr.vmem [resolvable:$true] %s14_s7 }
   0x3   :  { %s49_s8 = scalar_lea.vmem %s15_s7, 128  ;;  %p54_p1 = scmp.lt.s32.totalorder %s15_s7, %s15_s7 }
   0x4   :  { %p50_p0 = scmp.ne.s32.totalorder %s15_s7, %s49_s8  ;;  %p55_p2 = scmp.lt.s32.totalorder %s49_s8, %s49_s8 }
   0x6   :  { %p56_p3 = por %p55_p2, %p54_p1 }
   0x8   :  { %p57_p4 = pnand %p56_p3, %p50_p0 }
   0xa   :  { %60 = shalt.err (!%p57_p4)
}
   0xb   :  { %17 = dma.hbm_to_vmem [thread:$0]  %s103_s0, 128, %s15_s7, [#allocation3]  }
   0xc   :  { %81 = dma.done.wait [#allocation3], 128  }
   0xd   :  { %82 = vsyncadd [#allocation3], 4294967168  ;;  %s86_s11 = smov [#allocation5]   ;;  %vm22_vm0 = vcmask 261120   ;;  %v21_v0 = vld [vmem:[#allocation2] sm:$0xff] }
   0xe   :  { %s30_s12 = sshll.u32 %s86_s11, 4  ;;  %23 = vst.msk [vmem:[#allocation5] sm:$0xff] %vm22_vm0, %v21_v0  ;;  %s31_s12 = int_to_ptr.vmem [resolvable:$true] %s30_s12 }
   0xf   :  { %s61_s13 = scalar_lea.vmem %s31_s12, 128  ;;  %p66_p6 = scmp.lt.s32.totalorder %s31_s12, %s31_s12 }
  0x10   :  { %p62_p5 = scmp.ne.s32.totalorder %s31_s12, %s61_s13  ;;  %p67_p7 = scmp.lt.s32.totalorder %s61_s13, %s61_s13 }
  0x12   :  { %p68_p8 = por %p67_p7, %p66_p6 }
  0x14   :  { %p69_p9 = pnand %p68_p8, %p62_p5 }
  0x16   :  { %72 = shalt.err (!%p69_p9)
}
  0x17   :  { %33 = dma.vmem_to_hbm [thread:$0]  %s31_s12, 128, %s104_s1, [#allocation4]  }
  0x18   :  { %83 = dma.done.wait [#allocation4], 128  }
  0x19   :  { %84 = vsyncadd [#allocation4], 4294967168 }
  0x1a   :  { %37 = vsyncpa [#allocation3], 1 }
  0x1b   :  { %38 = vsyncpa [#allocation4], 1 }

</bundles_post_ra>
